<compile_context>
chip_gen: v5e
topology: v5e:2x2
jax: 0.10.0
libtpu: 0.0.40
codegen_flags: <defaults>
</compile_context>

<pallas_src>
import functools
import math

import numpy as np
import jax
import jax.numpy as jnp
from jax.experimental import pallas as pl
from jax.experimental.pallas import tpu as pltpu


# ----------------------------------------------------------------------------
# Compiler params: scoped VMEM limit derived from the actual chip
# (leave ~25% headroom for double-buffered blocks + internal scratch).
# ----------------------------------------------------------------------------
try:
    _VMEM_CAP = int(getattr(pltpu.get_tpu_info(), "vmem_capacity_bytes",
                            128 * 1024 * 1024))
except Exception:  # pragma: no cover - conservative fallback
    _VMEM_CAP = 128 * 1024 * 1024
_VMEM_LIMIT = (_VMEM_CAP * 3) // 4          # ~48 MiB on v7x, ~96 MiB on v5e/v6e

_CPARAMS_1D = pltpu.CompilerParams(dimension_semantics=("parallel",),
                                   vmem_limit_bytes=_VMEM_LIMIT)

_BF16 = jnp.bfloat16


# ----------------------------------------------------------------------------
# Kernel 1: fused self-attention (QK-fused proj -> per-head attn ->
#           head-concat -> single out-proj) + residual + LayerNorm(norm1).
#           One grid step per batch element.
# ----------------------------------------------------------------------------
def _self_attn_kernel(tgt_ref, pos_ref, wqk_ref, bqk_ref, wv_ref, bv_ref,
                      wo_ref, bo_ref, g_ref, beta_ref, out_ref, w_ref,
                      *, nhead, scale, L, E, Lp):
    x = tgt_ref[0]                                       # (L, E) f32 (value + residual)
    qk_in = (x + pos_ref[0]).astype(_BF16)               # (L, E) q = k input
    Dh = E // nhead

    # fused Q|K projection: one (L,E)@(E,2E) bf16 matmul, f32 accumulate
    qk = jnp.dot(qk_in, wqk_ref[...],
                 preferred_element_type=jnp.float32) + bqk_ref[...]
    v = jnp.dot(x.astype(_BF16), wv_ref[...],
                preferred_element_type=jnp.float32) + bv_ref[...]

    o_heads = []
    w_acc = jnp.zeros((L, L), jnp.float32)
    for h in range(nhead):                               # static unroll over heads
        lo, hi = h * Dh, (h + 1) * Dh
        q_h = qk[:, lo:hi].astype(_BF16)
        k_h = qk[:, E + lo:E + hi].astype(_BF16)
        v_h = v[:, lo:hi].astype(_BF16)
        s = jax.lax.dot_general(q_h, k_h, (((1,), (1,)), ((), ())),
                                preferred_element_type=jnp.float32) * scale
        m = jnp.max(s, axis=-1, keepdims=True)
        e = jnp.exp(s - m)
        p = e / jnp.sum(e, axis=-1, keepdims=True)       # exact softmax (weights returned)
        w_acc = w_acc + p
        o_heads.append(jnp.dot(p.astype(_BF16), v_h,
                               preferred_element_type=jnp.float32))

    # head-contiguous concat -> ONE full-depth (L,E)@(E,E) out-projection
    o_cat = jnp.concatenate(o_heads, axis=-1)            # (L, E)
    attn = jnp.dot(o_cat.astype(_BF16), wo_ref[...],
                   preferred_element_type=jnp.float32) + bo_ref[...]

    # fused residual + LayerNorm (norm1) epilogue in f32
    y = x + attn
    mu = jnp.mean(y, axis=-1, keepdims=True)
    var = jnp.mean((y - mu) ** 2, axis=-1, keepdims=True)
    out_ref[0] = (y - mu) * jax.lax.rsqrt(var + 1e-5) * g_ref[...] + beta_ref[...]

    # head-averaged weights, padded to a lane-dense store
    w_mean = w_acc * (1.0 / nhead)
    if Lp > L:
        w_mean = jnp.concatenate(
            [w_mean, jnp.zeros((L, Lp - L), jnp.float32)], axis=-1)
    w_ref[0] = w_mean


# ----------------------------------------------------------------------------
# Kernel 2: fused cross-attention over image memory tokens.  TB frames per
#           grid step; Q/K/V projections are big 2-D matmuls; a precomputed
#           additive block-diagonal mask keeps each frame attending only to
#           its own n keys.  Attention weights are never materialized.
# ----------------------------------------------------------------------------
def _cross_attn_kernel(q_ref, mem_ref, pos_ref, mask_ref, wq_ref, bq_ref,
                       wk_ref, bk_ref, wv_ref, bv_ref, wo_ref, bo_ref, out_ref,
                       *, nhead, scale, TB, n, E):
    q_in = q_ref[0]                                      # (TB, E) f32
    mem = mem_ref[...]                                   # (TB, n, E) f32
    k_in = mem + pos_ref[...]
    Dh = E // nhead

    mem_f = mem.reshape(TB * n, E).astype(_BF16)         # (TB*n, E)
    kin_f = k_in.reshape(TB * n, E).astype(_BF16)

    q = jnp.dot(q_in.astype(_BF16), wq_ref[...],
                preferred_element_type=jnp.float32) + bq_ref[...]       # (TB, E)
    k = jnp.dot(kin_f, wk_ref[...],
                preferred_element_type=jnp.float32) + bk_ref[...]       # (TB*n, E)
    v = jnp.dot(mem_f, wv_ref[...],
                preferred_element_type=jnp.float32) + bv_ref[...]       # (TB*n, E)

    mask = mask_ref[...]                                 # (TB, TB*n) additive 0 / -1e30
    o_heads = []
    for h in range(nhead):
        lo, hi = h * Dh, (h + 1) * Dh
        q_h = q[:, lo:hi].astype(_BF16)                  # (TB, Dh)
        k_h = k[:, lo:hi].astype(_BF16)                  # (TB*n, Dh)
        v_h = v[:, lo:hi].astype(_BF16)
        s = jax.lax.dot_general(q_h, k_h, (((1,), (1,)), ((), ())),
                                preferred_element_type=jnp.float32) * scale
        s = s + mask                                     # block-diagonal frame mask
        m = jnp.max(s, axis=-1, keepdims=True)
        e = jnp.exp(s - m)
        denom = jnp.sum(e, axis=-1, keepdims=True)
        # flash-style: normalize after PV, reciprocal on the EUP (internal only)
        o_h = jnp.dot(e.astype(_BF16), v_h,
                      preferred_element_type=jnp.float32) \
              * pl.reciprocal(denom, approx=True)
        o_heads.append(o_h)

    o_cat = jnp.concatenate(o_heads, axis=-1)            # (TB, E)
    out_ref[0] = jnp.dot(o_cat.astype(_BF16), wo_ref[...],
                         preferred_element_type=jnp.float32) + bo_ref[...]


# ----------------------------------------------------------------------------
# Kernel 3: fused (residual + norm3) -> FFN(relu) -> (residual + norm4),
#           row-tiled grid.
# ----------------------------------------------------------------------------
def _ln_ffn_ln_kernel(x_ref, r_ref, g3_ref, b3_ref, w1_ref, b1_ref,
                      w2_ref, b2_ref, g4_ref, b4_ref, out_ref):
    y = x_ref[...] + r_ref[...]
    mu = jnp.mean(y, axis=-1, keepdims=True)
    var = jnp.mean((y - mu) ** 2, axis=-1, keepdims=True)
    t3 = (y - mu) * jax.lax.rsqrt(var + 1e-5) * g3_ref[...] + b3_ref[...]

    h = jnp.dot(t3.astype(_BF16), w1_ref[...],
                preferred_element_type=jnp.float32) + b1_ref[...]
    h = jnp.maximum(h, 0.0)
    f = jnp.dot(h.astype(_BF16), w2_ref[...],
                preferred_element_type=jnp.float32) + b2_ref[...]

    y2 = t3 + f
    mu2 = jnp.mean(y2, axis=-1, keepdims=True)
    var2 = jnp.mean((y2 - mu2) ** 2, axis=-1, keepdims=True)
    out_ref[...] = (y2 - mu2) * jax.lax.rsqrt(var2 + 1e-5) * g4_ref[...] + b4_ref[...]


# ----------------------------------------------------------------------------
# Wrappers
# ----------------------------------------------------------------------------
def self_attention_block(tgt_b, pos_b, pp, nhead):
    # tgt_b, pos_b: (B, L, E) batch-major
    B, L, E = tgt_b.shape
    Dh = E // nhead
    scale = 1.0 / math.sqrt(Dh)
    Lp = ((L + 127) // 128) * 128                        # lane-dense weights store
    kern = functools.partial(_self_attn_kernel, nhead=nhead, scale=scale,
                             L=L, E=E, Lp=Lp)
    out, w = pl.pallas_call(
        kern,
        grid=(B,),
        out_shape=(jax.ShapeDtypeStruct((B, L, E), jnp.float32),
                   jax.ShapeDtypeStruct((B, L, Lp), jnp.float32)),
        in_specs=[
            pl.BlockSpec((1, L, E), lambda i: (i, 0, 0)),
            pl.BlockSpec((1, L, E), lambda i: (i, 0, 0)),
            pl.BlockSpec((E, 2 * E), lambda i: (0, 0)),
            pl.BlockSpec((1, 2 * E), lambda i: (0, 0)),
            pl.BlockSpec((E, E), lambda i: (0, 0)),
            pl.BlockSpec((1, E), lambda i: (0, 0)),
            pl.BlockSpec((E, E), lambda i: (0, 0)),
            pl.BlockSpec((1, E), lambda i: (0, 0)),
            pl.BlockSpec((1, E), lambda i: (0, 0)),
            pl.BlockSpec((1, E), lambda i: (0, 0)),
        ],
        out_specs=(pl.BlockSpec((1, L, E), lambda i: (i, 0, 0)),
                   pl.BlockSpec((1, L, Lp), lambda i: (i, 0, 0))),
        compiler_params=_CPARAMS_1D,
    )(tgt_b, pos_b, pp["sa_wqk"], pp["sa_bqk"], pp["sa_wv"], pp["sa_bv"],
      pp["sa_wo"], pp["sa_bo"], pp["n1_g"], pp["n1_b"])
    return out, w[:, :, :L]


def _pick_frame_tile(bs, target=8):
    """Frames per K2 grid step; prefer >=2 steps so both v7x TCs get work."""
    tb = max(1, min(target, bs))
    while tb > 1 and -(-bs // tb) < 2:
        tb = max(1, tb // 2)
    return tb


def cross_attention_block(q_2d, mem_b, pos_b, pp, nhead):
    # q_2d: (bs, E)   mem_b, pos_b: (bs, n, E)
    bs, E = q_2d.shape
    n = mem_b.shape[1]
    Dh = E // nhead
    scale = 1.0 / math.sqrt(Dh)
    TB = _pick_frame_tile(bs)
    nsteps = -(-bs // TB)
    bs_pad = nsteps * TB
    if bs_pad != bs:
        padf = bs_pad - bs
        q_2d = jnp.concatenate([q_2d, jnp.zeros((padf, E), q_2d.dtype)], axis=0)
        mem_b = jnp.concatenate([mem_b, jnp.zeros((padf, n, E), mem_b.dtype)], axis=0)
        pos_b = jnp.concatenate([pos_b, jnp.zeros((padf, n, E), pos_b.dtype)], axis=0)
    q3 = q_2d.reshape(nsteps, TB, E)

    # additive block-diagonal mask: frame j of the tile only sees keys [j*n,(j+1)*n)
    mask_np = np.full((TB, TB * n), -1e30, np.float32)
    for j in range(TB):
        mask_np[j, j * n:(j + 1) * n] = 0.0
    mask = jnp.asarray(mask_np)

    kern = functools.partial(_cross_attn_kernel, nhead=nhead, scale=scale,
                             TB=TB, n=n, E=E)
    out = pl.pallas_call(
        kern,
        grid=(nsteps,),
        out_shape=jax.ShapeDtypeStruct((nsteps, TB, E), jnp.float32),
        in_specs=[
            pl.BlockSpec((1, TB, E), lambda i: (i, 0, 0)),
            pl.BlockSpec((TB, n, E), lambda i: (i, 0, 0)),
            pl.BlockSpec((TB, n, E), lambda i: (i, 0, 0)),
            pl.BlockSpec((TB, TB * n), lambda i: (0, 0)),
            pl.BlockSpec((E, E), lambda i: (0, 0)),
            pl.BlockSpec((1, E), lambda i: (0, 0)),
            pl.BlockSpec((E, E), lambda i: (0, 0)),
            pl.BlockSpec((1, E), lambda i: (0, 0)),
            pl.BlockSpec((E, E), lambda i: (0, 0)),
            pl.BlockSpec((1, E), lambda i: (0, 0)),
            pl.BlockSpec((E, E), lambda i: (0, 0)),
            pl.BlockSpec((1, E), lambda i: (0, 0)),
        ],
        out_specs=pl.BlockSpec((1, TB, E), lambda i: (i, 0, 0)),
        compiler_params=_CPARAMS_1D,
    )(q3, mem_b, pos_b, mask,
      pp["ca_wq"], pp["ca_bq"], pp["ca_wk"], pp["ca_bk"],
      pp["ca_wv"], pp["ca_bv"], pp["ca_wo"], pp["ca_bo"])
    return out.reshape(bs_pad, E)[:bs]                    # (bs, E)


def _row_tile(n_rows):
    """Row tile for K3: multiple of 8, 512 preferred (near HBM roofline on
    v5e/v6e), capped so the grid has >=2 steps (both v7x TensorCores busy)."""
    tile = 512
    if n_rows < 2 * tile:
        tile = max(8, (n_rows // 16) * 8)
    return max(8, tile)


def ln_ffn_ln(x2d, r2d, pp):
    N, E = x2d.shape
    Dff = pp["ffn_w1"].shape[1]
    tile = _row_tile(N)
    nsteps = -(-N // tile)
    Np = nsteps * tile
    if Np != N:                                           # robust for any N: pad + slice
        padz = jnp.zeros((Np - N, E), x2d.dtype)
        x2d = jnp.concatenate([x2d, padz], axis=0)
        r2d = jnp.concatenate([r2d, padz], axis=0)
    out = pl.pallas_call(
        _ln_ffn_ln_kernel,
        grid=(nsteps,),
        out_shape=jax.ShapeDtypeStruct((Np, E), jnp.float32),
        in_specs=[
            pl.BlockSpec((tile, E), lambda i: (i, 0)),
            pl.BlockSpec((tile, E), lambda i: (i, 0)),
            pl.BlockSpec((1, E), lambda i: (0, 0)),
            pl.BlockSpec((1, E), lambda i: (0, 0)),
            pl.BlockSpec((E, Dff), lambda i: (0, 0)),
            pl.BlockSpec((1, Dff), lambda i: (0, 0)),
            pl.BlockSpec((Dff, E), lambda i: (0, 0)),
            pl.BlockSpec((1, E), lambda i: (0, 0)),
            pl.BlockSpec((1, E), lambda i: (0, 0)),
            pl.BlockSpec((1, E), lambda i: (0, 0)),
        ],
        out_specs=pl.BlockSpec((tile, E), lambda i: (i, 0)),
        compiler_params=_CPARAMS_1D,
    )(x2d, r2d, pp["n3_g"], pp["n3_b"], pp["ffn_w1"], pp["ffn_b1"],
      pp["ffn_w2"], pp["ffn_b2"], pp["n4_g"], pp["n4_b"])
    return out[:N]


# ----------------------------------------------------------------------------
# One-time parameter preprocessing (hoisted out of the forward):
# QK weight concat, bf16 weight casts, bias/LN reshapes.
# NOTE: real PyTorch checkpoints store y = x @ W.T (packed in_proj); transpose/
# split accordingly when loading — synthetic init here already uses x @ W.
# ----------------------------------------------------------------------------
def preprocess_params(params):
    sa, ca, ffn = params["self_attn"], params["cross_attn"], params["ffn"]
    E = sa["wq"].shape[0]
    Dff = ffn["w1"].shape[1]
    return dict(
        sa_wqk=jnp.concatenate([sa["wq"], sa["wk"]], axis=1).astype(_BF16),
        sa_bqk=jnp.concatenate([sa["bq"], sa["bk"]], axis=0).reshape(1, 2 * E),
        sa_wv=sa["wv"].astype(_BF16), sa_bv=sa["bv"].reshape(1, E),
        sa_wo=sa["wo"].astype(_BF16), sa_bo=sa["bo"].reshape(1, E),
        ca_wq=ca["wq"].astype(_BF16), ca_bq=ca["bq"].reshape(1, E),
        ca_wk=ca["wk"].astype(_BF16), ca_bk=ca["bk"].reshape(1, E),
        ca_wv=ca["wv"].astype(_BF16), ca_bv=ca["bv"].reshape(1, E),
        ca_wo=ca["wo"].astype(_BF16), ca_bo=ca["bo"].reshape(1, E),
        ffn_w1=ffn["w1"].astype(_BF16), ffn_b1=ffn["b1"].reshape(1, Dff),
        ffn_w2=ffn["w2"].astype(_BF16), ffn_b2=ffn["b2"].reshape(1, E),
        n1_g=params["norm1"]["gamma"].reshape(1, E), n1_b=params["norm1"]["beta"].reshape(1, E),
        n3_g=params["norm3"]["gamma"].reshape(1, E), n3_b=params["norm3"]["beta"].reshape(1, E),
        n4_g=params["norm4"]["gamma"].reshape(1, E), n4_b=params["norm4"]["beta"].reshape(1, E),
    )


# ----------------------------------------------------------------------------
# TimeDecoderLayer forward (eval mode: dropout = identity)
# ----------------------------------------------------------------------------
def time_decoder_layer_forward(pp, tgt, memory, query_pos, query_time_pos,
                               pos, durations, nhead):
    t, b, c = tgt.shape
    n_tokens, bs, f = memory.shape
    assert sum(durations) == bs

    # one-time layout change to batch-major for lane-dense per-batch blocks
    tgt_b = jnp.transpose(tgt, (1, 0, 2))                          # (b, t, c)
    pos_sum_b = jnp.transpose(query_pos + query_time_pos, (1, 0, 2))
    qpos_b = jnp.transpose(query_pos, (1, 0, 2))
    mem_b = jnp.transpose(memory, (1, 0, 2))                       # (bs, n, c)
    impos_b = jnp.transpose(pos, (1, 0, 2))

    # K1: self-attention + residual + norm1
    tgt1, weights = self_attention_block(tgt_b, pos_sum_b, pp, nhead)  # (b,t,c),(b,t,t)

    # static duration gather/scatter (replaces the per-clip python loops)
    gather_idx_np = np.concatenate(
        [np.arange(durations[i], dtype=np.int32) + i * t for i in range(b)])
    inv_idx_np = np.full((b * t,), bs, dtype=np.int32)             # bs -> zero row
    inv_idx_np[gather_idx_np] = np.arange(bs, dtype=np.int32)
    gather_idx = jnp.asarray(gather_idx_np)
    inv_idx = jnp.asarray(inv_idx_np)

    tgt1_flat = tgt1.reshape(b * t, c)                             # row = i_b*t + s
    q_cross = (jnp.take(tgt1_flat, gather_idx, axis=0)
               + jnp.take(qpos_b.reshape(b * t, c), gather_idx, axis=0))   # (bs, c)

    # K2: cross-attention over image memory tokens (weights discarded, never stored)
    cross_out = cross_attention_block(q_cross, mem_b, impos_b, pp, nhead)  # (bs, c)

    # scatter back to (b*t, c), zero-padding past each clip's duration
    padded = jnp.concatenate([cross_out, jnp.zeros((1, c), cross_out.dtype)], axis=0)
    cross_scattered = jnp.take(padded, inv_idx, axis=0)            # (b*t, c)

    # K3: (residual + norm3) -> FFN -> (residual + norm4)
    out_flat = ln_ffn_ln(tgt1_flat, cross_scattered, pp)
    out = out_flat.reshape(b, t, c).transpose(1, 0, 2)             # (t, b, c)
    return out, weights


# ----------------------------------------------------------------------------
# Deterministic parameter init (synthetic; shapes follow the nn.Module __init__)
# ----------------------------------------------------------------------------
def init_params(key, d_model, dim_feedforward):
    def w(k, shape, scale=0.05):
        return scale * jax.random.normal(k, shape, jnp.float32)

    def mha_params(k):
        ks = jax.random.split(k, 8)
        return dict(
            wq=w(ks[0], (d_model, d_model)), bq=w(ks[1], (d_model,)),
            wk=w(ks[2], (d_model, d_model)), bk=w(ks[3], (d_model,)),
            wv=w(ks[4], (d_model, d_model)), bv=w(ks[5], (d_model,)),
            wo=w(ks[6], (d_model, d_model)), bo=w(ks[7], (d_model,)),
        )

    def ln_params():
        return dict(gamma=jnp.ones((d_model,), jnp.float32),
                    beta=jnp.zeros((d_model,), jnp.float32))

    ks = jax.random.split(key, 8)
    return dict(
        self_attn=mha_params(ks[0]),
        cross_attn=mha_params(ks[1]),
        ffn=dict(
            w1=w(ks[2], (d_model, dim_feedforward)),
            b1=w(ks[3], (dim_feedforward,)),
            w2=w(ks[4], (dim_feedforward, d_model)),
            b2=w(ks[5], (d_model,)),
        ),
        norm1=ln_params(),
        norm3=ln_params(),
        norm4=ln_params(),
    )


# ----------------------------------------------------------------------------
if __name__ == "__main__":
    d_model, nhead, dim_feedforward = 32, 4, 64
    t, b = 8, 2
    durations = [5, 3]           # static per-clip lengths, sum == bs
    bs = sum(durations)
    n_tokens = 16

    key = jax.random.PRNGKey(0)
    k_tgt, k_mem, k_qp, k_qtp, k_pos, k_par = jax.random.split(key, 6)

    tgt = jax.random.normal(k_tgt, (t, b, d_model), jnp.float32)
    memory = jax.random.normal(k_mem, (n_tokens, bs, d_model), jnp.float32)
    query_pos = jax.random.normal(k_qp, (t, b, d_model), jnp.float32)
    query_time_pos = jax.random.normal(k_qtp, (t, b, d_model), jnp.float32)
    pos = jax.random.normal(k_pos, (n_tokens, bs, d_model), jnp.float32)

    params = init_params(k_par, d_model, dim_feedforward)
    pp = preprocess_params(params)     # one-time: QK concat, bf16 casts, reshapes

    out, weights = time_decoder_layer_forward(
        pp, tgt, memory, query_pos, query_time_pos, pos, durations, nhead)
    jax.block_until_ready((out, weights))

    assert out.shape == (t, b, d_model)
    assert weights.shape == (b, t, t)
    print("KERNEL_OK")
</pallas_src>

<mosaic_0001>
module attributes {stable_mosaic.version = 11 : i64} {
  func.func @_self_attn_kernel(%arg0: i32, %arg1: memref<1x8x32xf32, #tpu.memory_space<vmem>>, %arg2: memref<1x8x32xf32, #tpu.memory_space<vmem>>, %arg3: memref<32x64xbf16, #tpu.memory_space<vmem>>, %arg4: memref<1x64xf32, #tpu.memory_space<vmem>>, %arg5: memref<32x32xbf16, #tpu.memory_space<vmem>>, %arg6: memref<1x32xf32, #tpu.memory_space<vmem>>, %arg7: memref<32x32xbf16, #tpu.memory_space<vmem>>, %arg8: memref<1x32xf32, #tpu.memory_space<vmem>>, %arg9: memref<1x32xf32, #tpu.memory_space<vmem>>, %arg10: memref<1x32xf32, #tpu.memory_space<vmem>>, %arg11: memref<1x8x32xf32, #tpu.memory_space<vmem>>, %arg12: memref<1x8x128xf32, #tpu.memory_space<vmem>>) attributes {dimension_semantics = [#tpu.dimension_semantics<parallel>], iteration_bounds = array<i64: 2>, scalar_prefetch = 0 : i64, scratch_operands = 0 : i64, tpu.core_type = #tpu.core_type<tc>, window_params = [{transform_indices = @transform_0, window_bounds = array<i64: 1, 8, 32>}, {transform_indices = @transform_1, window_bounds = array<i64: 1, 8, 32>}, {pipeline_mode = #tpu.pipeline_mode<synchronous>, transform_indices = @transform_2, window_bounds = array<i64: 32, 64>}, {pipeline_mode = #tpu.pipeline_mode<synchronous>, transform_indices = @transform_3, window_bounds = array<i64: 1, 64>}, {pipeline_mode = #tpu.pipeline_mode<synchronous>, transform_indices = @transform_4, window_bounds = array<i64: 32, 32>}, {pipeline_mode = #tpu.pipeline_mode<synchronous>, transform_indices = @transform_5, window_bounds = array<i64: 1, 32>}, {pipeline_mode = #tpu.pipeline_mode<synchronous>, transform_indices = @transform_6, window_bounds = array<i64: 32, 32>}, {pipeline_mode = #tpu.pipeline_mode<synchronous>, transform_indices = @transform_7, window_bounds = array<i64: 1, 32>}, {pipeline_mode = #tpu.pipeline_mode<synchronous>, transform_indices = @transform_8, window_bounds = array<i64: 1, 32>}, {pipeline_mode = #tpu.pipeline_mode<synchronous>, transform_indices = @transform_9, window_bounds = array<i64: 1, 32>}, {transform_indices = @transform_10, window_bounds = array<i64: 1, 8, 32>}, {transform_indices = @transform_11, window_bounds = array<i64: 1, 8, 128>}]} {
    %c0 = arith.constant 0 : index
    %c0_0 = arith.constant 0 : index
    %c0_1 = arith.constant 0 : index
    %0 = vector.load %arg1[%c0, %c0_0, %c0_1] : memref<1x8x32xf32, #tpu.memory_space<vmem>>, vector<1x8x32xf32>
    %1 = vector.shape_cast %0 : vector<1x8x32xf32> to vector<8x32xf32>
    %c0_2 = arith.constant 0 : index
    %c0_3 = arith.constant 0 : index
    %c0_4 = arith.constant 0 : index
    %2 = vector.load %arg2[%c0_2, %c0_3, %c0_4] : memref<1x8x32xf32, #tpu.memory_space<vmem>>, vector<1x8x32xf32>
    %3 = vector.shape_cast %2 : vector<1x8x32xf32> to vector<8x32xf32>
    %4 = arith.addf %1, %3 : vector<8x32xf32>
    %5 = arith.truncf %4 : vector<8x32xf32> to vector<8x32xbf16>
    %c0_5 = arith.constant 0 : index
    %c0_6 = arith.constant 0 : index
    %6 = vector.load %arg3[%c0_5, %c0_6] : memref<32x64xbf16, #tpu.memory_space<vmem>>, vector<32x64xbf16>
    %cst = arith.constant dense<0.000000e+00> : vector<8x64xf32>
    %7 = tpu.matmul %5, %6, %cst {dimension_numbers = #tpu.dot_dimension_numbers<[1], [0], [0], [1], [0, 0, 1, 1], [], []>} : vector<8x32xbf16>, vector<32x64xbf16>, vector<8x64xf32> -> vector<8x64xf32>
    %c0_7 = arith.constant 0 : index
    %c0_8 = arith.constant 0 : index
    %8 = vector.load %arg4[%c0_7, %c0_8] : memref<1x64xf32, #tpu.memory_space<vmem>>, vector<1x64xf32>
    %9 = vector.broadcast %8 : vector<1x64xf32> to vector<8x64xf32>
    %10 = arith.addf %7, %9 : vector<8x64xf32>
    %11 = arith.truncf %1 : vector<8x32xf32> to vector<8x32xbf16>
    %c0_9 = arith.constant 0 : index
    %c0_10 = arith.constant 0 : index
    %12 = vector.load %arg5[%c0_9, %c0_10] : memref<32x32xbf16, #tpu.memory_space<vmem>>, vector<32x32xbf16>
    %cst_11 = arith.constant dense<0.000000e+00> : vector<8x32xf32>
    %13 = tpu.matmul %11, %12, %cst_11 {dimension_numbers = #tpu.dot_dimension_numbers<[1], [0], [0], [1], [0, 0, 1, 1], [], []>} : vector<8x32xbf16>, vector<32x32xbf16>, vector<8x32xf32> -> vector<8x32xf32>
    %c0_12 = arith.constant 0 : index
    %c0_13 = arith.constant 0 : index
    %14 = vector.load %arg6[%c0_12, %c0_13] : memref<1x32xf32, #tpu.memory_space<vmem>>, vector<1x32xf32>
    %15 = vector.broadcast %14 : vector<1x32xf32> to vector<8x32xf32>
    %16 = arith.addf %13, %15 : vector<8x32xf32>
    %cst_14 = arith.constant 0.000000e+00 : f32
    %17 = vector.broadcast %cst_14 : f32 to vector<8x8xf32>
    %18 = vector.extract_strided_slice %10 {offsets = [0, 0], sizes = [8, 8], strides = [1, 1]} : vector<8x64xf32> to vector<8x8xf32>
    %19 = arith.truncf %18 : vector<8x8xf32> to vector<8x8xbf16>
    %20 = vector.extract_strided_slice %10 {offsets = [0, 32], sizes = [8, 8], strides = [1, 1]} : vector<8x64xf32> to vector<8x8xf32>
    %21 = arith.truncf %20 : vector<8x8xf32> to vector<8x8xbf16>
    %22 = vector.extract_strided_slice %16 {offsets = [0, 0], sizes = [8, 8], strides = [1, 1]} : vector<8x32xf32> to vector<8x8xf32>
    %23 = arith.truncf %22 : vector<8x8xf32> to vector<8x8xbf16>
    %cst_15 = arith.constant dense<0.000000e+00> : vector<8x8xf32>
    %24 = tpu.matmul %19, %21, %cst_15 {dimension_numbers = #tpu.dot_dimension_numbers<[1], [1], [0], [0], [0, 0, 1, 0], [], []>} : vector<8x8xbf16>, vector<8x8xbf16>, vector<8x8xf32> -> vector<8x8xf32>
    %cst_16 = arith.constant 0.353553385 : f32
    %25 = vector.broadcast %cst_16 : f32 to vector<8x8xf32>
    %26 = arith.mulf %24, %25 : vector<8x8xf32>
    %cst_17 = arith.constant dense<0xFF800000> : vector<8xf32>
    %27 = vector.multi_reduction <maximumf>, %26, %cst_17 [1] : vector<8x8xf32> to vector<8xf32>
    %28 = vector.shape_cast %27 : vector<8xf32> to vector<8x1xf32>
    %29 = vector.broadcast %28 : vector<8x1xf32> to vector<8x8xf32>
    %30 = arith.subf %26, %29 : vector<8x8xf32>
    %31 = math.exp %30 : vector<8x8xf32>
    %cst_18 = arith.constant dense<0.000000e+00> : vector<8xf32>
    %32 = vector.multi_reduction <add>, %31, %cst_18 [1] : vector<8x8xf32> to vector<8xf32>
    %33 = vector.shape_cast %32 : vector<8xf32> to vector<8x1xf32>
    %34 = vector.broadcast %33 : vector<8x1xf32> to vector<8x8xf32>
    %35 = arith.divf %31, %34 : vector<8x8xf32>
    %36 = arith.addf %17, %35 : vector<8x8xf32>
    %37 = arith.truncf %35 : vector<8x8xf32> to vector<8x8xbf16>
    %cst_19 = arith.constant dense<0.000000e+00> : vector<8x8xf32>
    %38 = tpu.matmul %37, %23, %cst_19 {dimension_numbers = #tpu.dot_dimension_numbers<[1], [0], [0], [1], [0, 0, 1, 1], [], []>} : vector<8x8xbf16>, vector<8x8xbf16>, vector<8x8xf32> -> vector<8x8xf32>
    %39 = vector.extract_strided_slice %10 {offsets = [0, 8], sizes = [8, 8], strides = [1, 1]} : vector<8x64xf32> to vector<8x8xf32>
    %40 = arith.truncf %39 : vector<8x8xf32> to vector<8x8xbf16>
    %41 = vector.extract_strided_slice %10 {offsets = [0, 40], sizes = [8, 8], strides = [1, 1]} : vector<8x64xf32> to vector<8x8xf32>
    %42 = arith.truncf %41 : vector<8x8xf32> to vector<8x8xbf16>
    %43 = vector.extract_strided_slice %16 {offsets = [0, 8], sizes = [8, 8], strides = [1, 1]} : vector<8x32xf32> to vector<8x8xf32>
    %44 = arith.truncf %43 : vector<8x8xf32> to vector<8x8xbf16>
    %cst_20 = arith.constant dense<0.000000e+00> : vector<8x8xf32>
    %45 = tpu.matmul %40, %42, %cst_20 {dimension_numbers = #tpu.dot_dimension_numbers<[1], [1], [0], [0], [0, 0, 1, 0], [], []>} : vector<8x8xbf16>, vector<8x8xbf16>, vector<8x8xf32> -> vector<8x8xf32>
    %cst_21 = arith.constant 0.353553385 : f32
    %46 = vector.broadcast %cst_21 : f32 to vector<8x8xf32>
    %47 = arith.mulf %45, %46 : vector<8x8xf32>
    %cst_22 = arith.constant dense<0xFF800000> : vector<8xf32>
    %48 = vector.multi_reduction <maximumf>, %47, %cst_22 [1] : vector<8x8xf32> to vector<8xf32>
    %49 = vector.shape_cast %48 : vector<8xf32> to vector<8x1xf32>
    %50 = vector.broadcast %49 : vector<8x1xf32> to vector<8x8xf32>
    %51 = arith.subf %47, %50 : vector<8x8xf32>
    %52 = math.exp %51 : vector<8x8xf32>
    %cst_23 = arith.constant dense<0.000000e+00> : vector<8xf32>
    %53 = vector.multi_reduction <add>, %52, %cst_23 [1] : vector<8x8xf32> to vector<8xf32>
    %54 = vector.shape_cast %53 : vector<8xf32> to vector<8x1xf32>
    %55 = vector.broadcast %54 : vector<8x1xf32> to vector<8x8xf32>
    %56 = arith.divf %52, %55 : vector<8x8xf32>
    %57 = arith.addf %36, %56 : vector<8x8xf32>
    %58 = arith.truncf %56 : vector<8x8xf32> to vector<8x8xbf16>
    %cst_24 = arith.constant dense<0.000000e+00> : vector<8x8xf32>
    %59 = tpu.matmul %58, %44, %cst_24 {dimension_numbers = #tpu.dot_dimension_numbers<[1], [0], [0], [1], [0, 0, 1, 1], [], []>} : vector<8x8xbf16>, vector<8x8xbf16>, vector<8x8xf32> -> vector<8x8xf32>
    %60 = vector.extract_strided_slice %10 {offsets = [0, 16], sizes = [8, 8], strides = [1, 1]} : vector<8x64xf32> to vector<8x8xf32>
    %61 = arith.truncf %60 : vector<8x8xf32> to vector<8x8xbf16>
    %62 = vector.extract_strided_slice %10 {offsets = [0, 48], sizes = [8, 8], strides = [1, 1]} : vector<8x64xf32> to vector<8x8xf32>
    %63 = arith.truncf %62 : vector<8x8xf32> to vector<8x8xbf16>
    %64 = vector.extract_strided_slice %16 {offsets = [0, 16], sizes = [8, 8], strides = [1, 1]} : vector<8x32xf32> to vector<8x8xf32>
    %65 = arith.truncf %64 : vector<8x8xf32> to vector<8x8xbf16>
    %cst_25 = arith.constant dense<0.000000e+00> : vector<8x8xf32>
    %66 = tpu.matmul %61, %63, %cst_25 {dimension_numbers = #tpu.dot_dimension_numbers<[1], [1], [0], [0], [0, 0, 1, 0], [], []>} : vector<8x8xbf16>, vector<8x8xbf16>, vector<8x8xf32> -> vector<8x8xf32>
    %cst_26 = arith.constant 0.353553385 : f32
    %67 = vector.broadcast %cst_26 : f32 to vector<8x8xf32>
    %68 = arith.mulf %66, %67 : vector<8x8xf32>
    %cst_27 = arith.constant dense<0xFF800000> : vector<8xf32>
    %69 = vector.multi_reduction <maximumf>, %68, %cst_27 [1] : vector<8x8xf32> to vector<8xf32>
    %70 = vector.shape_cast %69 : vector<8xf32> to vector<8x1xf32>
    %71 = vector.broadcast %70 : vector<8x1xf32> to vector<8x8xf32>
    %72 = arith.subf %68, %71 : vector<8x8xf32>
    %73 = math.exp %72 : vector<8x8xf32>
    %cst_28 = arith.constant dense<0.000000e+00> : vector<8xf32>
    %74 = vector.multi_reduction <add>, %73, %cst_28 [1] : vector<8x8xf32> to vector<8xf32>
    %75 = vector.shape_cast %74 : vector<8xf32> to vector<8x1xf32>
    %76 = vector.broadcast %75 : vector<8x1xf32> to vector<8x8xf32>
    %77 = arith.divf %73, %76 : vector<8x8xf32>
    %78 = arith.addf %57, %77 : vector<8x8xf32>
    %79 = arith.truncf %77 : vector<8x8xf32> to vector<8x8xbf16>
    %cst_29 = arith.constant dense<0.000000e+00> : vector<8x8xf32>
    %80 = tpu.matmul %79, %65, %cst_29 {dimension_numbers = #tpu.dot_dimension_numbers<[1], [0], [0], [1], [0, 0, 1, 1], [], []>} : vector<8x8xbf16>, vector<8x8xbf16>, vector<8x8xf32> -> vector<8x8xf32>
    %81 = vector.extract_strided_slice %10 {offsets = [0, 24], sizes = [8, 8], strides = [1, 1]} : vector<8x64xf32> to vector<8x8xf32>
    %82 = arith.truncf %81 : vector<8x8xf32> to vector<8x8xbf16>
    %83 = vector.extract_strided_slice %10 {offsets = [0, 56], sizes = [8, 8], strides = [1, 1]} : vector<8x64xf32> to vector<8x8xf32>
    %84 = arith.truncf %83 : vector<8x8xf32> to vector<8x8xbf16>
    %85 = vector.extract_strided_slice %16 {offsets = [0, 24], sizes = [8, 8], strides = [1, 1]} : vector<8x32xf32> to vector<8x8xf32>
    %86 = arith.truncf %85 : vector<8x8xf32> to vector<8x8xbf16>
    %cst_30 = arith.constant dense<0.000000e+00> : vector<8x8xf32>
    %87 = tpu.matmul %82, %84, %cst_30 {dimension_numbers = #tpu.dot_dimension_numbers<[1], [1], [0], [0], [0, 0, 1, 0], [], []>} : vector<8x8xbf16>, vector<8x8xbf16>, vector<8x8xf32> -> vector<8x8xf32>
    %cst_31 = arith.constant 0.353553385 : f32
    %88 = vector.broadcast %cst_31 : f32 to vector<8x8xf32>
    %89 = arith.mulf %87, %88 : vector<8x8xf32>
    %cst_32 = arith.constant dense<0xFF800000> : vector<8xf32>
    %90 = vector.multi_reduction <maximumf>, %89, %cst_32 [1] : vector<8x8xf32> to vector<8xf32>
    %91 = vector.shape_cast %90 : vector<8xf32> to vector<8x1xf32>
    %92 = vector.broadcast %91 : vector<8x1xf32> to vector<8x8xf32>
    %93 = arith.subf %89, %92 : vector<8x8xf32>
    %94 = math.exp %93 : vector<8x8xf32>
    %cst_33 = arith.constant dense<0.000000e+00> : vector<8xf32>
    %95 = vector.multi_reduction <add>, %94, %cst_33 [1] : vector<8x8xf32> to vector<8xf32>
    %96 = vector.shape_cast %95 : vector<8xf32> to vector<8x1xf32>
    %97 = vector.broadcast %96 : vector<8x1xf32> to vector<8x8xf32>
    %98 = arith.divf %94, %97 : vector<8x8xf32>
    %99 = arith.addf %78, %98 : vector<8x8xf32>
    %100 = arith.truncf %98 : vector<8x8xf32> to vector<8x8xbf16>
    %cst_34 = arith.constant dense<0.000000e+00> : vector<8x8xf32>
    %101 = tpu.matmul %100, %86, %cst_34 {dimension_numbers = #tpu.dot_dimension_numbers<[1], [0], [0], [1], [0, 0, 1, 1], [], []>} : vector<8x8xbf16>, vector<8x8xbf16>, vector<8x8xf32> -> vector<8x8xf32>
    %102 = tpu.concatenate %38, %59, %80, %101 in 1 : vector<8x8xf32>, vector<8x8xf32>, vector<8x8xf32>, vector<8x8xf32> -> vector<8x32xf32>
    %103 = arith.truncf %102 : vector<8x32xf32> to vector<8x32xbf16>
    %c0_35 = arith.constant 0 : index
    %c0_36 = arith.constant 0 : index
    %104 = vector.load %arg7[%c0_35, %c0_36] : memref<32x32xbf16, #tpu.memory_space<vmem>>, vector<32x32xbf16>
    %cst_37 = arith.constant dense<0.000000e+00> : vector<8x32xf32>
    %105 = tpu.matmul %103, %104, %cst_37 {dimension_numbers = #tpu.dot_dimension_numbers<[1], [0], [0], [1], [0, 0, 1, 1], [], []>} : vector<8x32xbf16>, vector<32x32xbf16>, vector<8x32xf32> -> vector<8x32xf32>
    %c0_38 = arith.constant 0 : index
    %c0_39 = arith.constant 0 : index
    %106 = vector.load %arg8[%c0_38, %c0_39] : memref<1x32xf32, #tpu.memory_space<vmem>>, vector<1x32xf32>
    %107 = vector.broadcast %106 : vector<1x32xf32> to vector<8x32xf32>
    %108 = arith.addf %105, %107 : vector<8x32xf32>
    %109 = arith.addf %1, %108 : vector<8x32xf32>
    %cst_40 = arith.constant dense<0.000000e+00> : vector<8xf32>
    %110 = vector.multi_reduction <add>, %109, %cst_40 [1] : vector<8x32xf32> to vector<8xf32>
    %111 = vector.shape_cast %110 : vector<8xf32> to vector<8x1xf32>
    %cst_41 = arith.constant 3.200000e+01 : f32
    %112 = vector.broadcast %cst_41 : f32 to vector<8x1xf32>
    %113 = arith.divf %111, %112 : vector<8x1xf32>
    %114 = vector.broadcast %113 : vector<8x1xf32> to vector<8x32xf32>
    %115 = arith.subf %109, %114 : vector<8x32xf32>
    %116 = arith.mulf %115, %115 : vector<8x32xf32>
    %cst_42 = arith.constant dense<0.000000e+00> : vector<8xf32>
    %117 = vector.multi_reduction <add>, %116, %cst_42 [1] : vector<8x32xf32> to vector<8xf32>
    %118 = vector.shape_cast %117 : vector<8xf32> to vector<8x1xf32>
    %cst_43 = arith.constant 3.200000e+01 : f32
    %119 = vector.broadcast %cst_43 : f32 to vector<8x1xf32>
    %120 = arith.divf %118, %119 : vector<8x1xf32>
    %121 = vector.broadcast %113 : vector<8x1xf32> to vector<8x32xf32>
    %122 = arith.subf %109, %121 : vector<8x32xf32>
    %cst_44 = arith.constant 9.99999974E-6 : f32
    %123 = vector.broadcast %cst_44 : f32 to vector<8x1xf32>
    %124 = arith.addf %120, %123 : vector<8x1xf32>
    %125 = math.rsqrt %124 : vector<8x1xf32>
    %126 = vector.broadcast %125 : vector<8x1xf32> to vector<8x32xf32>
    %127 = arith.mulf %122, %126 : vector<8x32xf32>
    %c0_45 = arith.constant 0 : index
    %c0_46 = arith.constant 0 : index
    %128 = vector.load %arg9[%c0_45, %c0_46] : memref<1x32xf32, #tpu.memory_space<vmem>>, vector<1x32xf32>
    %129 = vector.broadcast %128 : vector<1x32xf32> to vector<8x32xf32>
    %130 = arith.mulf %127, %129 : vector<8x32xf32>
    %c0_47 = arith.constant 0 : index
    %c0_48 = arith.constant 0 : index
    %131 = vector.load %arg10[%c0_47, %c0_48] : memref<1x32xf32, #tpu.memory_space<vmem>>, vector<1x32xf32>
    %132 = vector.broadcast %131 : vector<1x32xf32> to vector<8x32xf32>
    %133 = arith.addf %130, %132 : vector<8x32xf32>
    %c0_49 = arith.constant 0 : index
    %c0_50 = arith.constant 0 : index
    %c0_51 = arith.constant 0 : index
    %134 = vector.load %arg11[%c0_49, %c0_50, %c0_51] : memref<1x8x32xf32, #tpu.memory_space<vmem>>, vector<1x8x32xf32>
    %135 = vector.shape_cast %134 : vector<1x8x32xf32> to vector<8x32xf32>
    %136 = vector.shape_cast %133 : vector<8x32xf32> to vector<1x8x32xf32>
    tpu.vector_store %arg11[%c0_49, %c0_50, %c0_51], %136 {strides = array<i32>} : memref<1x8x32xf32, #tpu.memory_space<vmem>>, vector<1x8x32xf32>,
    %cst_52 = arith.constant 2.500000e-01 : f32
    %137 = vector.broadcast %cst_52 : f32 to vector<8x8xf32>
    %138 = arith.mulf %99, %137 : vector<8x8xf32>
    %cst_53 = arith.constant 0.000000e+00 : f32
    %139 = vector.broadcast %cst_53 : f32 to vector<8x120xf32>
    %140 = tpu.concatenate %138, %139 in 1 : vector<8x8xf32>, vector<8x120xf32> -> vector<8x128xf32>
    %c0_54 = arith.constant 0 : index
    %c0_55 = arith.constant 0 : index
    %c0_56 = arith.constant 0 : index
    %141 = vector.load %arg12[%c0_54, %c0_55, %c0_56] : memref<1x8x128xf32, #tpu.memory_space<vmem>>, vector<1x8x128xf32>
    %142 = vector.shape_cast %141 : vector<1x8x128xf32> to vector<8x128xf32>
    %143 = vector.shape_cast %140 : vector<8x128xf32> to vector<1x8x128xf32>
    tpu.vector_store %arg12[%c0_54, %c0_55, %c0_56], %143 {strides = array<i32>} : memref<1x8x128xf32, #tpu.memory_space<vmem>>, vector<1x8x128xf32>,
    return
  }
  func.func @transform_0(%arg0: i32) -> (i32, i32, i32) {
    %c0_i32 = arith.constant 0 : i32
    %c0_i32_0 = arith.constant 0 : i32
    %c0_i32_1 = arith.constant 0 : i32
    return %arg0, %c0_i32, %c0_i32_0 : i32, i32, i32
  }
  func.func @transform_1(%arg0: i32) -> (i32, i32, i32) {
    %c0_i32 = arith.constant 0 : i32
    %c0_i32_0 = arith.constant 0 : i32
    %c0_i32_1 = arith.constant 0 : i32
    return %arg0, %c0_i32, %c0_i32_0 : i32, i32, i32
  }
  func.func @transform_2(%arg0: i32) -> (i32, i32) {
    %c0_i32 = arith.constant 0 : i32
    %c0_i32_0 = arith.constant 0 : i32
    %c0_i32_1 = arith.constant 0 : i32
    return %c0_i32, %c0_i32_0 : i32, i32
  }
  func.func @transform_3(%arg0: i32) -> (i32, i32) {
    %c0_i32 = arith.constant 0 : i32
    %c0_i32_0 = arith.constant 0 : i32
    %c0_i32_1 = arith.constant 0 : i32
    return %c0_i32, %c0_i32_0 : i32, i32
  }
  func.func @transform_4(%arg0: i32) -> (i32, i32) {
    %c0_i32 = arith.constant 0 : i32
    %c0_i32_0 = arith.constant 0 : i32
    %c0_i32_1 = arith.constant 0 : i32
    return %c0_i32, %c0_i32_0 : i32, i32
  }
  func.func @transform_5(%arg0: i32) -> (i32, i32) {
    %c0_i32 = arith.constant 0 : i32
    %c0_i32_0 = arith.constant 0 : i32
    %c0_i32_1 = arith.constant 0 : i32
    return %c0_i32, %c0_i32_0 : i32, i32
  }
  func.func @transform_6(%arg0: i32) -> (i32, i32) {
    %c0_i32 = arith.constant 0 : i32
    %c0_i32_0 = arith.constant 0 : i32
    %c0_i32_1 = arith.constant 0 : i32
    return %c0_i32, %c0_i32_0 : i32, i32
  }
  func.func @transform_7(%arg0: i32) -> (i32, i32) {
    %c0_i32 = arith.constant 0 : i32
    %c0_i32_0 = arith.constant 0 : i32
    %c0_i32_1 = arith.constant 0 : i32
    return %c0_i32, %c0_i32_0 : i32, i32
  }
  func.func @transform_8(%arg0: i32) -> (i32, i32) {
    %c0_i32 = arith.constant 0 : i32
    %c0_i32_0 = arith.constant 0 : i32
    %c0_i32_1 = arith.constant 0 : i32
    return %c0_i32, %c0_i32_0 : i32, i32
  }
  func.func @transform_9(%arg0: i32) -> (i32, i32) {
    %c0_i32 = arith.constant 0 : i32
    %c0_i32_0 = arith.constant 0 : i32
    %c0_i32_1 = arith.constant 0 : i32
    return %c0_i32, %c0_i32_0 : i32, i32
  }
  func.func @transform_10(%arg0: i32) -> (i32, i32, i32) {
    %c0_i32 = arith.constant 0 : i32
    %c0_i32_0 = arith.constant 0 : i32
    %c0_i32_1 = arith.constant 0 : i32
    return %arg0, %c0_i32, %c0_i32_0 : i32, i32, i32
  }
  func.func @transform_11(%arg0: i32) -> (i32, i32, i32) {
    %c0_i32 = arith.constant 0 : i32
    %c0_i32_0 = arith.constant 0 : i32
    %c0_i32_1 = arith.constant 0 : i32
    return %arg0, %c0_i32, %c0_i32_0 : i32, i32, i32
  }
}

</mosaic_0001>

<bundles_post_ra>
// kernel: tpu_custom_call.1
= control target key start
LH: loop header
LB: loop body
LE: loop exit
PB: predicated region body
PF: predicated region fallthrough
CT: control target
= control target key end

     0   :  { %s1976_s0 = inlined_call_operand.hbm [shape: f32[2,8,32], index: 0, kind: input, shape index: {}]   ;;  %s1977_s1 = inlined_call_operand.hbm [shape: f32[2,8,32], index: 1, kind: input, shape index: {}]   ;;  %s1978_s2 = inlined_call_operand.hbm [shape: bf16[32,64], index: 2, kind: input, shape index: {}]   ;;  %s1979_s3 = inlined_call_operand.vmem [shape: f32[1,64], index: 3, kind: input, shape index: {}]   ;;  %s1980_s4 = inlined_call_operand.hbm [shape: bf16[32,32], index: 4, kind: input, shape index: {}]   ;;  %s1981_s5 = inlined_call_operand.vmem [shape: f32[1,32], index: 5, kind: input, shape index: {}]   ;;  %s1982_s6 = inlined_call_operand.hbm [shape: bf16[32,32], index: 6, kind: input, shape index: {}]   ;;  %s1983_s7 = inlined_call_operand.vmem [shape: f32[1,32], index: 7, kind: input, shape index: {}]   ;;  %s1984_s8 = inlined_call_operand.vmem [shape: f32[1,32], index: 8, kind: input, shape index: {}]   ;;  %s1985_s9 = inlined_call_operand.vmem [shape: f32[1,32], index: 9, kind: input, shape index: {}]   ;;  %s1986_s10 = inlined_call_operand.hbm [shape: f32[2,8,32], index: 10, kind: output, shape index: {0}]   ;;  %s1987_s11 = inlined_call_operand.hbm [shape: f32[2,8,128], index: 11, kind: output, shape index: {1}]  }
   0x1   :  { %1994 = sst [smem:[#allocation26_spill]] %s1978_s2 }
   0x2   :  { %1995 = sst [smem:[#allocation27_spill]] %s1980_s4 }
   0x3   :  { %1996 = sst [smem:[#allocation28_spill]] %s1982_s6 }
   0x4   :  { %1997 = sst [smem:[#allocation29_spill]] %s1985_s9 }
   0x5   :  { %17 = vsyncpa [#allocation3], 0 }
   0x6   :  { %19 = vsyncpa [#allocation3 + $0x1], 0 }
   0x7   :  { %20 = vsyncpa [#allocation6], 0 }
   0x8   :  { %22 = vsyncpa [#allocation6 + $0x1], 0 }
   0x9   :  { %23 = vsyncpa [#allocation9], 0 }
   0xa   :  { %24 = vsyncpa [#allocation4], 0 }
   0xb   :  { %26 = vsyncpa [#allocation4 + $0x1], 0 }
   0xc   :  { %27 = vsyncpa [#allocation13], 0 }
   0xd   :  { %29 = vsyncpa [#allocation13 + $0x1], 0  ;;  %s1683_s17 = smov 0   ;;  %s1685_s18 = smov 0  }
   0xe   :  { %s1687_s19 = smov 0   ;;  %s1689_s20 = smov 0  }
   0xf LB: > { %1998 = sst [smem:[#allocation20_spill]] %s1593_s17  ;;  %s1707_s24 = sadd.s32 4294967295, %s1605_s20   ;;  %s1605_s20 = sphi %s1689_s20, %s2019_s20   ;;  %s1601_s19 = sphi %s1687_s19, %s2021_s19   ;;  %s1597_s18 = sphi %s1685_s18, %s2023_s18   ;;  %s1593_s17 = sphi %s1683_s17, %s2022_s17  }
  0x10   : > { %1999 = sst [smem:[#allocation21_spill]] %s1601_s19  ;;  %p1156_p0 = scmp.ge.s32.totalorder %s1605_s20, 1 }
  0x11   : > { %2000 = sst [smem:[#allocation22_spill]] %s1605_s20  ;;  %p56_p1 = scmp.eq.s32.totalorder %s1707_s24, 0 }
  0x12   : > { %s2001_s2 = sld [smem:[#allocation26_spill]]  ;;  %p312_p2 = scmp.lt.s32.totalorder %s1605_s20, 3 }
  0x13   : > { %s1607_s26 = smov [#allocation7]   ;;  %s2003_s4 = sld [smem:[#allocation27_spill]] }
  0x14   : > { %p1712_p3 = pnand %p1156_p0, %p312_p2  ;;  %s325_s27 = sshll.u32 %s1607_s26, 4  ;;  %s326_s27 = int_to_ptr.vmem [resolvable:$true] %s325_s27 }
  0x15   : > { %s2005_s6 = sld [smem:[#allocation28_spill]]  ;;  %s1608_s16 = smov [#allocation8]  }
  0x16   : > { %p1240_p4 = pneg %p1712_p3  ;;  %s342_s21 = sshll.u32 %s1608_s16, 4  ;;  %s343_s21 = int_to_ptr.vmem [resolvable:$true] %s342_s21 }
  0x17   : > { %s1609_s22 = smov 64   ;;  %s1610_s26 = smov 4  }
  0x18   : > { %s323_s23 = sshll.u32 %s2001_s2, 4  ;;  %p1724_p6 = pnand %p1240_p4, %p56_p1  ;;  %s324_s23 = int_to_ptr.hbm [resolvable:$true] %s323_s23 }
  0x19   : > { %s340_s30 = sshll.u32 %s2003_s4, 4  ;;  %s1611_s28 = smov [#allocation10]   ;;  %s341_s30 = int_to_ptr.hbm [resolvable:$true] %s340_s30 }
  0x1a   : > { %1243 = dma.hbm_to_vmem [thread:$0]  (!%p1724_p6), %s324_s23, 256, %s326_s27, [#allocation6], %s1609_s22, %s1609_s22, %s1610_s26  }
  0x1b   : > { %s357_s15 = sshll.u32 %s2005_s6, 4  ;;  %s359_s29 = sshll.u32 %s1611_s28, 4  ;;  %s358_s15 = int_to_ptr.hbm [resolvable:$true] %s357_s15  ;;  %s360_s29 = int_to_ptr.vmem [resolvable:$true] %s359_s29 }
  0x1c   : > { %1246 = dma.hbm_to_vmem [thread:$0]  (!%p1724_p6), %s341_s30, 256, %s343_s21, [#allocation9], %s1609_s22, %s1609_s22, %s1610_s26  }
  0x1d   : > { %1249 = dma.hbm_to_vmem [thread:$0]  (!%p1724_p6), %s358_s15, 256, %s360_s29, [#allocation9], %s1609_s22, %s1609_s22, %s1610_s26  }
  0x1e   : > { %s1155_s13 = sadd.s32 4294967294, %s1605_s20   ;;  %s1739_s14 = sadd.s32 1, %s1605_s20  }
  0x1f   : > { %2006 = sst [smem:[#allocation23_spill]] %s1739_s14  ;;  %s42_s16 = sadd.s32 1, %s1601_s19 }
  0x20   : > { %s39_s23 = ssub.s32 %s1605_s20, %s1739_s14  ;;  %p49_p7 = scmp.ne.s32.totalorder %s1601_s19, %s1597_s18 }
  0x21   : > { %p40_p8 = scmp.eq.s32.totalorder %s39_s23, 0  ;;  %p50_p9 = scmp.eq.s32.totalorder %s1605_s20, 0 }
  0x22   : > { %p55_p10 = scmp.ne.s32.totalorder %s1597_s18, %s1593_s17  ;;  %p273_p11 = scmp.eq.s32.totalorder %s1707_s24, 1 }
  0x23   : > { %s1751_s27 = scalar_select %p40_p8, %s1601_s19, %s42_s16  }
  0x24   : > { %p1753_p12 = por %p50_p9, %p49_p7  ;;  %p1759_p13 = por %p56_p1, %p55_p10 }
  0x25   : > { %2007 = sst [smem:[#allocation24_spill]] %s1751_s27  ;;  %p1763_p0 = por %p273_p11, %p49_p7 }
  0x26   : > { %p279_p2 = scmp.eq.s32.totalorder %s1155_s13, 1  ;;  %p1267_p4 = scmp.lt.s32.totalorder %s1605_s20, 2 }
  0x27   : > { %s382_s21 = sand.u32 1, %s1601_s19   ;;  %s1162_s28 = sshll.u32 %s1605_s20, 3 }
  0x28   : > { %p1769_p6 = por %p279_p2, %p55_p10  ;;  %s1161_s26 = sshll.u32 %s382_s21, 3 }
  0x29   : > { %s390_s23 = scalar_lea.hbm %s1976_s0, %s1162_s28  ;;  %s386_s4 = scalar_lea.vmem [#allocation2], %s1161_s26 }
  0x2a   : > { %s2011_s22 = scalar_select %p1769_p6, 1, 0 }
  0x2b   : > { %s392_s2 = sshll.u32 %s390_s23, 4  ;;  %s394_s6 = sshll.u32 %s386_s4, 4  ;;  %s393_s2 = int_to_ptr.hbm [resolvable:$true] %s392_s2  ;;  %s395_s6 = int_to_ptr.vmem [resolvable:$true] %s394_s6 }
  0x2c   : > { %2012 = sst [smem:[#allocation25_spill]] %s2011_s22  ;;  %p1779_p7 = pnand %p1267_p4, %p1753_p12 }
  0x2d   : > { %s409_s14 = scalar_lea.hbm %s1977_s1, %s1162_s28  ;;  %s401_s22 = sand.u32 1, %s1605_s20  }
  0x2e   : > { %s383_s17 = scalar_lea.sflag [#allocation3], %s382_s21  ;;  %s1435_s29 = sshra.s32 %s393_s2, 4  ;;  %s1436_s29 = int_to_ptr.hbm [resolvable:$true] %s1435_s29 }
  0x2f   : > { %s1437_s16 = scalar_lea.hbm %s1436_s29, 8  ;;  %p1439_p9 = pneg %p1779_p7 }
  0x30   : > { %p1438_p8 = scmp.ne.s32.totalorder %s1436_s29, %s1437_s16  ;;  %s1442_s23 = scalar_lea.hbm %s1976_s0, 16 }
  0x31   : > { %p1443_p12 = scmp.lt.s32.totalorder %s1436_s29, %s1976_s0  ;;  %p1444_p2 = scmp.lt.s32.totalorder %s1442_s23, %s1437_s16 }
  0x32   : > { %p1440_p10 = pnand %p1439_p9, %p1438_p8 }
  0x33   : > { %p1445_p4 = por %p1444_p2, %p1443_p12 }
  0x34   : > { %p1441_p11 = pneg %p1440_p10 }
  0x36   : > { %p1446_p5 = pnand %p1445_p4, %p1441_p11 }
  0x38   : > { %1449 = shalt.err (!%p1446_p5)
}
  0x39   : > { %1253 = dma.hbm_to_vmem [thread:$0]  (!%p1779_p7), %s393_s2, 128, %s395_s6, %s383_s17  }
  0x3a   : > { %s411_s21 = sshll.u32 %s409_s14, 4  ;;  %s405_s28 = scalar_lea.vmem [#allocation5], %s1161_s26  ;;  %s412_s21 = int_to_ptr.hbm [resolvable:$true] %s411_s21 }
  0x3b   : > { %s413_s20 = sshll.u32 %s405_s28, 4  ;;  %s402_s9 = scalar_lea.sflag [#allocation6], %s401_s22  ;;  %s414_s20 = int_to_ptr.vmem [resolvable:$true] %s413_s20 }
  0x3c   : > { %s1465_s4 = sshra.s32 %s412_s21, 4  ;;  %s1472_s23 = scalar_lea.hbm %s1977_s1, 16  ;;  %s1466_s4 = int_to_ptr.hbm [resolvable:$true] %s1465_s4 }
  0x3d   : > { %s1467_s30 = scalar_lea.hbm %s1466_s4, 8  ;;  %p1473_p5 = scmp.lt.s32.totalorder %s1466_s4, %s1977_s1 }
  0x3e   : > { %p1468_p8 = scmp.ne.s32.totalorder %s1466_s4, %s1467_s30  ;;  %p1474_p11 = scmp.lt.s32.totalorder %s1472_s23, %s1467_s30 }
  0x40   : > { %p1470_p10 = pnand %p1468_p8, %p1439_p9  ;;  %p1475_p2 = por %p1474_p11, %p1473_p5 }
  0x42   : > { %p1471_p12 = pneg %p1470_p10 }
  0x44   : > { %p1476_p4 = pnand %p1475_p2, %p1471_p12 }
  0x46   : > { %1479 = shalt.err (!%p1476_p4)
}
  0x47   : > { %1256 = dma.hbm_to_vmem [thread:$0]  (!%p1779_p7), %s412_s21, 128, %s414_s20, %s402_s9  }
  0x48   : > { %422 = sbr.rel (%p1712_p3) target bundleno = 1809 (0x711), region = 60  ;;  %s1814_s6 = sand.u32 (!%p1712_p3), 1, %s1597_s18  }
  0x49   : > { %s1817_s17 = sshll.u32 (!%p1712_p3), %s1814_s6, 3  ;;  %s425_s14 = scalar_lea.sflag (!%p1712_p3), [#allocation3], %s1814_s6 }
  0x4a   : > { %s428_s22 = scalar_lea.vmem (!%p1712_p3), [#allocation2], %s1817_s17 }
  0x4d   : > { %1568 = dma.done.wait (%p1759_p13), %s425_s14, 128  }
  0x4e   : > { %1570 = vsyncadd (%p1759_p13), %s425_s14, 4294967168  ;;  %s434_s9 = sand.u32 1, %s1707_s24   ;;  %s438_s25 = scalar_lea.vmem [#allocation5], %s1817_s17 }
  0x4f   : > { %s435_s20 = scalar_lea.sflag [#allocation6], %s434_s9 }
  0x50   : > { %1572 = dma.done.wait (%p1759_p13), %s435_s20, 128  }
  0x51   : > { %1574 = vsyncadd (%p1759_p13), %s435_s20, 4294967168 }
  0x52   : > { %1576 = dma.done.wait (%p56_p1), [#allocation6], 256  }
  0x53   : > { %1578 = vsyncadd (%p56_p1), [#allocation6], 4294967040 }
  0x54   : > { %1580 = dma.done.wait (%p56_p1), [#allocation9], 512  }
  0x55   : > { %1582 = vsyncadd (%p56_p1), [#allocation9], 4294966784  ;;  %v1215_v0 = vld [vmem:[#allocation7 + $0x8] sm:$0xff]  ;;  %v1214_v2 = vld [vmem:[#allocation7] sm:$0xff]  ;;  %vm528_vm0 = vcmask 261120   ;;  %s1612_s13 = smov 120  }
  0x56   : > { %v1839_v1 = vld [vmem:[%s428_s22] sm:$0xff]  ;;  %v505_v3 = vld [vmem:[%s438_s25] sm:$0xff]  ;;  %538 = vmatpush.bf16.msra.mxu0 %v1215_v0  ;;  %s1613_s27 = smov 96   ;;  %s1614_s21 = smov 80   ;;  %vm587_vm1 = vcmask 64512   ;;  %vm637_vm2 = vcmask 1043456  }
  0x57   : > { %v506_v4 = vadd.f32 %v505_v3, %v1839_v1  ;;  %v1320_v6 = vld [vmem:[%s1979_s3] ss:$0 sm:$0xff]  ;;  %s1615_s28 = smov 72   ;;  %s1616_s4 = smov 112   ;;  %v1217_v11 = vld [vmem:[#allocation8 + $0x8] sm:$0xff]  ;;  %v1216_v12 = vld [vmem:[#allocation8] sm:$0xff]  ;;  %v545_v13 = vpack.c.bf16 %v1839_v1, %v1839_v1 }
  0x58   : > { %s1617_s30 = smov 104   ;;  %575 = vmatpush.bf16.msra.mxu1 %v1217_v11  ;;  %v1321_v29 = vld [vmem:[%s1981_s5] ss:$0 sm:$0xff]  ;;  %s1618_s23 = smov 88  }
  0x59   : > { %v507_v5 = vpack.c.bf16 %v506_v4, %v506_v4  ;;  %s502_s19 = scalar_lea.vmem [#allocation12], %s1817_s17  ;;  %s1619_s2 = smov 16  }
  0x5a   : > { %539 = vmatpush.bf16.msra.mxu0 %v1214_v2  ;;  %s1620_s14 = smov 8   ;;  %s1621_s22 = smov 24  }
  0x5b   : > { %s1210_s25 = sshll.u32 %s1707_s24, 3 }
  0x5c   : > { %576 = vmatpush.bf16.msra.mxu1 %v1216_v12 }
  0x5d   : > { %1181 = vmatmul.msk.bf16.vlgmr.msra.gmra.mxu0 %vm528_vm0, %v507_v5 }
  0x5f   : > { %1190 = vmatmul.msk.bf16.vlgmr.msra.gmra.mxu1 %vm528_vm0, %v545_v13 }
  0xda   : > { %v541_v7 = vpop.f32.mrf.mxu0 }
  0xdb   : > { %v542_v8 = vadd.f32 %v1320_v6, %v541_v7 }
  0xdc   : > { %v578_v21 = vpop.f32.mrf.mxu1 }
  0xdd   : > { %v582_v9 = vpack.c.bf16 %v542_v8, %v542_v8  ;;  %v579_v31 = vadd.f32 %v1321_v29, %v578_v21 }
  0xdf   : > { %654 = vrot.lane.b32.xlu2 %v582_v9, %s1612_s13  ;;  %585 = vrot.lane.b32.xlu0 %v582_v9, %s1613_s27  ;;  %v1866_v33 = vpack.c.bf16 %v579_v31, %v579_v31  ;;  %s998_s27 = sshll.u32 %s502_s19, 4  ;;  %s999_s27 = int_to_ptr.vmem [resolvable:$true] %s998_s27 }
  0xe1   : > { %v639_v39 = vsel %vm637_vm2, %v1866_v33, 0 }
  0xe2   : > { %v543_v10 = vpop.f32.mrf.mxu0  ;;  %648 = vmatpush.bf16.msra.mxu3 %v639_v39 }
  0xe4   : > { %v580_v22 = vpop.f32.mrf.mxu1 }
  0xe7   : > { %728 = vrot.lane.b32.xlu2 %v582_v9, %s1614_s21 }
  0xef   : > { %799 = vrot.lane.b32.xlu2 %v582_v9, %s1615_s28  ;;  %s972_s28 = scalar_lea.sflag [#allocation13], %s1814_s6 }
  0xf7   : > { %726 = vrot.lane.b32.xlu2 %v582_v9, %s1616_s4 }
  0xff   : > { %797 = vrot.lane.b32.xlu2 %v582_v9, %s1617_s30 }
 0x139   : > { %v1852_v14 = vpop.permute.xlu2 %654 }
 0x141   : > { %v729_v15 = vpop.permute.xlu2 %728 }
 0x142   : > { %v734_v16 = vsel %vm587_vm1, %v729_v15, 0 }
 0x143   : > { %743 = vmatpush.bf16.xpose.msrb.mxu1 %v734_v16 }
 0x149   : > { %v800_v17 = vpop.permute.xlu2 %799 }
 0x14a   : > { %v805_v59 = vsel %vm587_vm1, %v800_v17, 0 }
 0x151   : > { %v727_v18 = vpop.permute.xlu2 %726  ;;  %v586_v19 = vpop.permute.xlu0 %585 }
 0x152   : > { %1195 = vmatmul.msk.bf16.vlgmr.msrb.gmra.mxu1 %vm587_vm1, %v727_v18  ;;  %v592_v20 = vsel %vm587_vm1, %v586_v19, 0 }
 0x153   : > { %601 = vmatpush.bf16.xpose.msra.mxu2 %v592_v20 }
 0x159   : > { %v798_v41 = vpop.permute.xlu2 %797 }
 0x15a   : > { %1191 = vmatmul.msk.bf16.vlgmr.msra.gmra.mxu2 %vm587_vm1, %v582_v9 }
 0x1cf   : > { %v745_v23 = vpop.f32.mrf.mxu1 }
 0x1d0   : > { %v1858_v24 = vmul.f32 0.35355338, %v745_v23 }
 0x1d2   : > { %v750_v25 = vsel %vm587_vm1, %v1858_v24, -inf }
 0x1d3   : > { %751 = vmax.xlane.f32.xlu2 %v750_v25 }
 0x1d7   : > { %v747_v26 = vpop.f32.mrf.mxu1 }
 0x1dd   : > { %v603_v27 = vpop.f32.mrf.mxu2 }
 0x1de   : > { %v607_v28 = vmul.f32 0.35355338, %v603_v27 }
 0x1e0   : > { %v608_v30 = vsel %vm587_vm1, %v607_v28, -inf }
 0x1e1   : > { %609 = vmax.xlane.f32.xlu0 %v608_v30 }
 0x1e5   : > { %v605_v32 = vpop.f32.mrf.mxu2 }
 0x1eb   : > { %776 = vrot.lane.b32.xlu2 %v1866_v33, %s1616_s4 }
 0x246   : > { %v752_v48 = vpop.xlane.xlu2 %751 }
 0x247   : > { %v753_v3 = vsub.f32 %v1858_v24, %v752_v48 }
 0x249   : > { %v754_v4 = vmul.f32 1.442695, %v753_v3 }
 0x24e   : > { %v777_v55 = vpop.permute.xlu2 %776 }
 0x24f   : > { %v782_v56 = vsel %vm637_vm2, %v777_v55, 0 }
 0x250   : > { %791 = vmatpush.bf16.msrb.mxu2 %v782_v56 }
 0x254   : > { %v610_v34 = vpop.xlane.xlu0 %609 }
 0x255   : > { %v611_v35 = vsub.f32 %v607_v28, %v610_v34 }
 0x257   : > { %v612_v36 = vmul.f32 1.442695, %v611_v35 }
 0x259   : > { %1325 = vpow2.f32 %v612_v36 }
 0x25f   : > { %v1326_v37 = vpop.eup %1325 }
 0x260   : > { %v614_v38 = vsel %vm587_vm1, %v1326_v37, 0.0 }
 0x261   : > { %615 = vadd.xlane.f32.xlu1 %v614_v38 }
 0x27a   : > { %656 = vrot.lane.b32.xlu1 %v582_v9, %s1618_s23  ;;  %s1515_s23 = scalar_lea.hbm %s1987_s11, 16 }
 0x2d4   : > { %v616_v40 = vpop.xlane.xlu1 %615 }
 0x2d5   : > { %1327 = vrcp.f32 %v616_v40  ;;  %v628_v45 = vand.u32 2147483648, %v616_v40  ;;  %v626_v47 = vand.u32 2147483647, %v616_v40  ;;  %vm622_vm4 = vweird.f32 %v616_v40 }
 0x2d6   : > { %1329 = vpow2.f32 %v754_v4 }
 0x2d7   : > { %v629_v50 = vor.u32 1.1754944e-38, %v628_v45  ;;  %vm627_vm6 = vcmp.eq.f32.partialorder %v626_v47, 8.507059e+37 }
 0x2db   : > { %v1328_v42 = vpop.eup %1327 }
 0x2dc   : > { %v618_v43 = vmul.f32 %v1328_v42, %v616_v40  ;;  %vm623_vm3 = vweird.f32 %v1328_v42  ;;  %v1330_v8 = vpop.eup %1329 }
 0x2dd   : > { %vm624_vm5 = vmor %vm622_vm4, %vm623_vm3  ;;  %v756_v10 = vsel %vm587_vm1, %v1330_v8, 0.0 }
 0x2de   : > { %v619_v44 = vsub.f32 1.0, %v618_v43 }
 0x2e0   : > { %v620_v46 = vmul.f32 %v1328_v42, %v619_v44 }
 0x2e2   : > { %v621_v49 = vadd.f32 %v1328_v42, %v620_v46 }
 0x2e4   : > { %v625_v51 = vsel %vm624_vm5, %v1328_v42, %v621_v49 }
 0x2e5   : > { %v630_v52 = vsel %vm627_vm6, %v629_v50, %v625_v51  ;;  %vm883_vm6 = vcmask 195584  }
 0x2e6   : > { %v1873_v53 = vmul.f32 %v1326_v37, %v630_v52 }
 0x2e8   : > { %v633_v54 = vpack.c.bf16 %v1873_v53, %v1873_v53 }
 0x2ea   : > { %1192 = vmatmul.msk.bf16.vlgmr.msra.gmra.mxu3 %vm587_vm1, %v633_v54 }
 0x2ec   : > { %v657_v57 = vpop.permute.xlu1 %656 }
 0x2ed   : > { %v662_v58 = vsel %vm587_vm1, %v657_v57, 0 }
 0x2ee   : > { %671 = vmatpush.bf16.xpose.msrb.mxu3 %v662_v58 }
 0x2f6   : > { %814 = vmatpush.bf16.xpose.msra.mxu3 %v805_v59 }
 0x2fa   : > { %1193 = vmatmul.msk.bf16.vlgmr.msrb.gmra.mxu3 %vm587_vm1, %v1852_v14 }
 0x30a   : > { %1197 = vmatmul.msk.bf16.vlgmr.msra.gmra.mxu3 %vm587_vm1, %v798_v41 }
 0x36d   : > { %v1884_v60 = vpop.f32.mrf.mxu3 }
 0x375   : > { %v652_v61 = vpop.f32.mrf.mxu3 }
 0x37d   : > { %v673_v62 = vpop.f32.mrf.mxu3 }
 0x37e   : > { %v677_v63 = vmul.f32 0.35355338, %v673_v62 }
 0x380   : > { %v678_v0 = vsel %vm587_vm1, %v677_v63, -inf }
 0x381   : > { %679 = vmax.xlane.f32.xlu1 %v678_v0 }
 0x385   : > { %v675_v2 = vpop.f32.mrf.mxu3 }
 0x38d   : > { %v816_v5 = vpop.f32.mrf.mxu3 }
 0x38e   : > { %v820_v6 = vmul.f32 0.35355338, %v816_v5 }
 0x390   : > { %v821_v7 = vsel %vm587_vm1, %v820_v6, -inf }
 0x391   : > { %822 = vmax.xlane.f32.xlu0 %v821_v7 }
 0x395   : > { %v818_v9 = vpop.f32.mrf.mxu3 }
 0x399   : > { %757 = vadd.xlane.f32.xlu0 %v756_v10 }
 0x39a   : > { %705 = vrot.lane.b32.xlu1 %v1866_v33, %s1612_s13  ;;  %s996_s13 = scalar_lea.hbm %s1987_s11, %s1210_s25 }
 0x39b   : > { %s1000_s21 = sshll.u32 %s996_s13, 4  ;;  %s1001_s21 = int_to_ptr.hbm [resolvable:$true] %s1000_s21 }
 0x39c   : > { %s1509_s4 = sshra.s32 %s1001_s21, 4  ;;  %s1510_s4 = int_to_ptr.hbm [resolvable:$true] %s1509_s4 }
 0x39d   : > { %p1516_p7 = scmp.lt.s32.totalorder %s1510_s4, %s1987_s11 }
 0x3f4   : > { %v680_v11 = vpop.xlane.xlu1 %679 }
 0x3f5   : > { %v681_v12 = vsub.f32 %v677_v63, %v680_v11 }
 0x3f7   : > { %v682_v13 = vmul.f32 1.442695, %v681_v12 }
 0x3f9   : > { %1331 = vpow2.f32 %v682_v13  ;;  %v1219_v13 = vld [vmem:[#allocation10 + $0x8] sm:$0xff] }
 0x3fa   : > { %915 = vmatpush.bf16.msra.mxu1 %v1219_v13 }
 0x3ff   : > { %v1332_v14 = vpop.eup %1331 }
 0x400   : > { %v684_v15 = vsel %vm587_vm1, %v1332_v14, 0.0 }
 0x401   : > { %685 = vadd.xlane.f32.xlu0 %v684_v15 }
 0x404   : > { %v823_v16 = vpop.xlane.xlu0 %822 }
 0x405   : > { %v824_v17 = vsub.f32 %v820_v6, %v823_v16 }
 0x407   : > { %v825_v18 = vmul.f32 1.442695, %v824_v17 }
 0x409   : > { %1333 = vpow2.f32 %v825_v18 }
 0x40c   : > { %v706_v19 = vpop.permute.xlu1 %705  ;;  %v758_v20 = vpop.xlane.xlu0 %757 }
 0x40d   : > { %1335 = vrcp.f32 %v758_v20  ;;  %v711_v21 = vsel %vm637_vm2, %v706_v19, 0  ;;  %v770_v27 = vand.u32 2147483648, %v758_v20  ;;  %v768_v29 = vand.u32 2147483647, %v758_v20 }
 0x40e   : > { %720 = vmatpush.bf16.msrb.mxu0 %v711_v21  ;;  %vm764_vm8 = vweird.f32 %v758_v20 }
 0x40f   : > { %v1334_v22 = vpop.eup %1333  ;;  %v771_v31 = vor.u32 1.1754944e-38, %v770_v27  ;;  %vm769_vm10 = vcmp.eq.f32.partialorder %v768_v29, 8.507059e+37 }
 0x410   : > { %v827_v23 = vsel %vm587_vm1, %v1334_v22, 0.0 }
 0x411   : > { %828 = vadd.xlane.f32.xlu0 %v827_v23 }
 0x413   : > { %v1336_v24 = vpop.eup %1335 }
 0x414   : > { %v760_v25 = vmul.f32 %v1336_v24, %v758_v20  ;;  %vm765_vm7 = vweird.f32 %v1336_v24 }
 0x415   : > { %vm766_vm9 = vmor %vm764_vm8, %vm765_vm7 }
 0x416   : > { %v761_v26 = vsub.f32 1.0, %v760_v25 }
 0x418   : > { %v762_v28 = vmul.f32 %v1336_v24, %v761_v26 }
 0x41a   : > { %v763_v30 = vadd.f32 %v1336_v24, %v762_v28 }
 0x41c   : > { %v767_v32 = vsel %vm766_vm9, %v1336_v24, %v763_v30 }
 0x41d   : > { %v772_v34 = vsel %vm769_vm10, %v771_v31, %v767_v32 }
 0x41e   : > { %v773_v35 = vmul.f32 %v1330_v8, %v772_v34 }
 0x420   : > { %v775_v36 = vpack.c.bf16 %v773_v35, %v773_v35 }
 0x422   : > { %1196 = vmatmul.msk.bf16.vlgmr.msrb.gmra.mxu2 %vm587_vm1, %v775_v36 }
 0x425   : > { %847 = vrot.lane.b32.xlu0 %v1866_v33, %s1617_s30  ;;  %s1511_s30 = scalar_lea.hbm %s1510_s4, 8 }
 0x426   : > { %p1512_p1 = scmp.ne.s32.totalorder %s1510_s4, %s1511_s30  ;;  %p1517_p9 = scmp.lt.s32.totalorder %s1515_s23, %s1511_s30 }
 0x428   : > { %p1513_p3 = pnand %p1512_p1, %p1763_p0  ;;  %p1518_p8 = por %p1517_p9, %p1516_p7 }
 0x42a   : > { %p1514_p13 = pneg %p1513_p3 }
 0x42c   : > { %p1519_p10 = pnand %p1518_p8, %p1514_p13 }
 0x474   : > { %v686_v37 = vpop.xlane.xlu0 %685 }
 0x475   : > { %1337 = vrcp.f32 %v686_v37  ;;  %v698_v42 = vand.u32 2147483648, %v686_v37  ;;  %v696_v43 = vand.u32 2147483647, %v686_v37  ;;  %vm692_vm12 = vweird.f32 %v686_v37 }
 0x477   : > { %v699_v46 = vor.u32 1.1754944e-38, %v698_v42  ;;  %vm697_vm14 = vcmp.eq.f32.partialorder %v696_v43, 8.507059e+37 }
 0x47b   : > { %v1338_v38 = vpop.eup %1337 }
 0x47c   : > { %v688_v39 = vmul.f32 %v1338_v38, %v686_v37  ;;  %vm693_vm11 = vweird.f32 %v1338_v38 }
 0x47d   : > { %vm694_vm13 = vmor %vm692_vm12, %vm693_vm11 }
 0x47e   : > { %v689_v40 = vsub.f32 1.0, %v688_v39 }
 0x480   : > { %v690_v41 = vmul.f32 %v1338_v38, %v689_v40 }
 0x482   : > { %v691_v44 = vadd.f32 %v1338_v38, %v690_v41 }
 0x484   : > { %v695_v45 = vsel %vm694_vm13, %v1338_v38, %v691_v44  ;;  %v829_v47 = vpop.xlane.xlu0 %828 }
 0x485   : > { %1339 = vrcp.f32 %v829_v47  ;;  %v700_v48 = vsel %vm697_vm14, %v699_v46, %v695_v45  ;;  %v841_v54 = vand.u32 2147483648, %v829_v47  ;;  %v839_v56 = vand.u32 2147483647, %v829_v47 }
 0x486   : > { %v701_v49 = vmul.f32 %v1332_v14, %v700_v48  ;;  %vm835_vm3 = vweird.f32 %v829_v47  ;;  %v1218_v14 = vld [vmem:[#allocation10] sm:$0xff] }
 0x487   : > { %v842_v59 = vor.u32 1.1754944e-38, %v841_v54  ;;  %vm840_vm5 = vcmp.eq.f32.partialorder %v839_v56, 8.507059e+37  ;;  %916 = vmatpush.bf16.msra.mxu1 %v1218_v14 }
 0x488   : > { %v703_v33 = vpack.c.bf16 %v701_v49, %v701_v49  ;;  %v702_v58 = vadd.f32 %v701_v49, %v1873_v53 }
 0x48a   : > { %1194 = vmatmul.msk.bf16.vlgmr.msrb.gmra.mxu0 %vm587_vm1, %v703_v33  ;;  %v774_v0 = vadd.f32 %v773_v35, %v702_v58 }
 0x48b   : > { %v1340_v50 = vpop.eup %1339 }
 0x48c   : > { %v831_v51 = vmul.f32 %v1340_v50, %v829_v47  ;;  %vm836_vm15 = vweird.f32 %v1340_v50 }
 0x48d   : > { %vm837_vm4 = vmor %vm835_vm3, %vm836_vm15 }
 0x48e   : > { %v832_v52 = vsub.f32 1.0, %v831_v51 }
 0x490   : > { %v833_v55 = vmul.f32 %v1340_v50, %v832_v52 }
 0x492   : > { %v834_v57 = vadd.f32 %v1340_v50, %v833_v55 }
 0x494   : > { %v838_v61 = vsel %vm837_vm4, %v1340_v50, %v834_v57 }
 0x495   : > { %v843_v62 = vsel %vm840_vm5, %v842_v59, %v838_v61 }
 0x496   : > { %v844_v63 = vmul.f32 %v1334_v22, %v843_v62  ;;  %v1322_v22 = vld [vmem:[%s1983_s7] ss:$0 sm:$0xff] }
 0x497   : > { %v848_v2 = vpop.permute.xlu0 %847 }
 0x498   : > { %v853_v3 = vsel %vm637_vm2, %v848_v2, 0  ;;  %v845_v4 = vadd.f32 %v844_v63, %v774_v0  ;;  %v846_v5 = vpack.c.bf16 %v844_v63, %v844_v63  ;;  %vm881_vm2 = vcmask 130048  }
 0x499   : > { %862 = vmatpush.bf16.msra.mxu0 %v853_v3 }
 0x49a   : > { %v963_v6 = vmul.f32 0.25, %v845_v4 }
 0x49c   : > { %1198 = vmatmul.msk.bf16.vlgmr.msra.gmra.mxu0 %vm587_vm1, %v846_v5  ;;  %v964_v53 = vsel %vm587_vm1, %v963_v6, 0.0 }
 0x49d   : > { %965 = vst [vmem:[%s502_s19] sm:$0xff] %v964_v53 }
 0x4a5   : > { %v793_v7 = vpop.f32.mrf.mxu2 }
 0x4a6   : > { %873 = vrot.lane.b32.xlu0 %v793_v7, %s1619_s2 }
 0x4ad   : > { %v795_v8 = vpop.f32.mrf.mxu2 }
 0x507   : > { %v722_v9 = vpop.f32.mrf.mxu0 }
 0x508   : > { %869 = vrot.lane.b32.xlu1 %v722_v9, %s1620_s14 }
 0x50f   : > { %v724_v10 = vpop.f32.mrf.mxu0 }
 0x518   : > { %v874_v16 = vpop.permute.xlu0 %873 }
 0x519   : > { %v864_v11 = vpop.f32.mrf.mxu0 }
 0x51a   : > { %877 = vrot.lane.b32.xlu2 %v864_v11, %s1621_s22 }
 0x521   : > { %v866_v12 = vpop.f32.mrf.mxu0 }
 0x574   : > { %v878_v18 = vpop.permute.xlu2 %877 }
 0x57a   : > { %v870_v15 = vpop.permute.xlu1 %869 }
 0x57b   : > { %v880_v17 = vsel %vm587_vm1, %v1884_v60, %v870_v15  ;;  %v1622_v60 = vmov 32.0  }
 0x57c   : > { %v882_v19 = vsel %vm881_vm2, %v880_v17, %v874_v16  ;;  %1341 = vrcp.f32 %v1622_v60 }
 0x57d   : > { %v884_v20 = vsel %vm883_vm6, %v882_v19, %v878_v18 }
 0x57e   : > { %v885_v21 = vpack.c.bf16 %v884_v20, %v884_v20 }
 0x580   : > { %1207 = vmatmul.msk.bf16.vlgmr.msra.gmra.mxu1 %vm528_vm0, %v885_v21 }
 0x582   : > { %v1342_v28 = vpop.eup %1341 }
 0x583   : > { %v927_v29 = vmul.f32 32.0, %v1342_v28  ;;  %vm931_vm1 = vweird.f32 %v1342_v28 }
 0x585   : > { %v928_v30 = vsub.f32 1.0, %v927_v29 }
 0x587   : > { %v929_v31 = vmul.f32 %v1342_v28, %v928_v30 }
 0x589   : > { %v930_v32 = vadd.f32 %v1342_v28, %v929_v31 }
 0x58b   : > { %v932_v34 = vsel %vm931_vm1, %v1342_v28, %v930_v32 }
 0x5fd   : > { %v918_v23 = vpop.f32.mrf.mxu1 }
 0x5fe   : > { %v919_v24 = vadd.f32 %v1322_v22, %v918_v23 }
 0x600   : > { %v922_v25 = vadd.f32 %v919_v24, %v1839_v1 }
 0x602   : > { %v923_v26 = vsel %vm528_vm0, %v922_v25, 0.0 }
 0x603   : > { %924 = vadd.xlane.f32.xlu1 %v923_v26 }
 0x605   : > { %v920_v27 = vpop.f32.mrf.mxu1 }
 0x676   : > { %v925_v35 = vpop.xlane.xlu1 %924 }
 0x677   : > { %v933_v36 = vmul.f32 %v932_v34, %v925_v35 }
 0x679   : > { %v934_v1 = vsub.f32 %v922_v25, %v933_v36 }
 0x67b   : > { %v935_v37 = vmul.f32 %v934_v1, %v934_v1 }
 0x67d   : > { %v936_v38 = vsel %vm528_vm0, %v935_v37, 0.0 }
 0x67e   : > { %937 = vadd.xlane.f32.xlu0 %v936_v38 }
 0x67f   : > { %1522 = shalt.err (!%p1519_p10)
}
 0x680   : > { %1237 = dma.vmem_to_hbm [thread:$0]  (%p1763_p0), %s999_s27, 128, %s1001_s21, %s972_s28   ;;  %v1323_v48 = vld [vmem:[%s1984_s8] ss:$0 sm:$0xff] }
 0x681   : > { %s982_s12 = scalar_lea.hbm %s1986_s10, %s1210_s25  ;;  %s2014_s27 = sld [smem:[#allocation29_spill]] }
 0x682   : > { %s495_s21 = scalar_lea.vmem [#allocation11], %s1817_s17  ;;  %s986_s4 = sshll.u32 %s982_s12, 4  ;;  %s987_s4 = int_to_ptr.hbm [resolvable:$true] %s986_s4 }
 0x683   : > { %s984_s28 = sshll.u32 %s495_s21, 4  ;;  %s967_s24 = scalar_lea.sflag [#allocation4], %s1814_s6  ;;  %s985_s28 = int_to_ptr.vmem [resolvable:$true] %s984_s28 }
 0x684   : > { %s1537_s30 = sshra.s32 %s987_s4, 4  ;;  %s1543_s17 = scalar_lea.hbm %s1986_s10, 16  ;;  %s1538_s30 = int_to_ptr.hbm [resolvable:$true] %s1537_s30 }
 0x685   : > { %s1539_s25 = scalar_lea.hbm %s1538_s30, 8  ;;  %p1544_p2 = scmp.lt.s32.totalorder %s1538_s30, %s1986_s10 }
 0x686   : > { %p1540_p12 = scmp.ne.s32.totalorder %s1538_s30, %s1539_s25  ;;  %p1545_p4 = scmp.lt.s32.totalorder %s1543_s17, %s1539_s25 }
 0x687   : > { %v1324_v50 = vld [vmem:[%s2014_s27] ss:$0 sm:$0xff] }
 0x688   : > { %p1541_p5 = pnand %p1540_p12, %p1763_p0  ;;  %p1546_p1 = por %p1545_p4, %p1544_p2 }
 0x68a   : > { %p1542_p11 = pneg %p1541_p5 }
 0x68c   : > { %p1547_p3 = pnand %p1546_p1, %p1542_p11 }
 0x6f1   : > { %v938_v39 = vpop.xlane.xlu0 %937 }
 0x6f2   : > { %v939_v40 = vmul.f32 %v938_v39, %v932_v34 }
 0x6f4   : > { %v940_v41 = vadd.f32 1e-05, %v939_v40 }
 0x6f6   : > { %1343 = vrsqrt.f32 %v940_v41  ;;  %vm947_vm8 = vweird.f32 %v940_v41 }
 0x6fc   : > { %v1344_v42 = vpop.eup %1343 }
 0x6fd   : > { %v942_v43 = vmul.f32 %v1344_v42, %v940_v41  ;;  %vm948_vm7 = vweird.f32 %v1344_v42 }
 0x6fe   : > { %vm949_vm9 = vmor %vm947_vm8, %vm948_vm7 }
 0x6ff   : > { %v943_v44 = vmul.f32 %v1344_v42, %v942_v43 }
 0x701   : > { %v944_v45 = vmul.f32 0.5, %v943_v44 }
 0x703   : > { %v945_v46 = vsub.f32 1.5, %v944_v45 }
 0x705   : > { %v946_v47 = vmul.f32 %v1344_v42, %v945_v46 }
 0x707   : > { %v950_v49 = vsel %vm949_vm9, %v1344_v42, %v946_v47 }
 0x708   : > { %v951_v33 = vmul.f32 %v950_v49, %v934_v1 }
 0x70a   : > { %v956_v51 = vmul.f32 %v1323_v48, %v951_v33 }
 0x70c   : > { %v961_v52 = vadd.f32 %v1324_v50, %v956_v51 }
 0x70e   : > { %962 = vst.msk [vmem:[%s495_s21] sm:$0xff] %vm528_vm0, %v961_v52 }
 0x70f   : > { %1550 = shalt.err (!%p1547_p3)
}
 0x710   : > { %1236 = dma.vmem_to_hbm [thread:$0]  (%p1763_p0), %s985_s28, 128, %s987_s4, %s967_s24  }
 0x711 PF: > { %s2015_s6 = sld [smem:[#allocation20_spill]] }
 0x712   : > { %s2017_s19 = sld [smem:[#allocation22_spill]] }
 0x717   : > { %s1012_s22 = sand.u32 1, %s2015_s6  }
 0x718   : > { %p2018_p13 = scmp.ge.s32.totalorder %s2017_s19, 2  ;;  %s1013_s9 = scalar_lea.sflag [#allocation4], %s1012_s22 }
 0x71a   : > { %p1258_p7 = pnand %p2018_p13, %p1769_p6 }
 0x71c   : > { %p1259_p9 = pneg %p1258_p7 }
 0x71e   : > { %1584 = dma.done.wait (%p1259_p9), %s1013_s9, 128  }
 0x71f   : > { %1586 = vsyncadd (%p1259_p9), %s1013_s9, 4294967168  ;;  %s1023_s20 = scalar_lea.sflag [#allocation13], %s1012_s22 }
 0x720   : > { %1588 = dma.done.wait (%p1259_p9), %s1023_s20, 128  }
 0x721   : > { %1590 = vsyncadd (%p1259_p9), %s1023_s20, 4294967168  ;;  %s2019_s20 = sld [smem:[#allocation23_spill]]  ;;  %s2022_s17 = smov %s1597_s18 }
 0x722   : > { %s2020_s12 = sld [smem:[#allocation21_spill]] }
 0x723   : > { %s2021_s19 = sld [smem:[#allocation24_spill]] }
 0x727   : > { %p32_p0 = scmp.ge.s32.totalorder %s2019_s20, 4  }
 0x728   : > { %s2023_s18 = smov %s2020_s12 }
 0x729   :  { %34 = sbr.rel (!%p32_p0) target bundleno = 15 (0xf), region = 147 }
 0x72e   :  { %1029 = vsyncpa [#allocation3], 1 }
 0x72f   :  { %1031 = vsyncpa [#allocation3 + $0x1], 1 }
 0x730   :  { %1032 = vsyncpa [#allocation6], 1 }
 0x731   :  { %1034 = vsyncpa [#allocation6 + $0x1], 1 }
 0x732   :  { %1035 = vsyncpa [#allocation9], 1 }
 0x733   :  { %1036 = vsyncpa [#allocation4], 1 }
 0x734   :  { %1038 = vsyncpa [#allocation4 + $0x1], 1 }
 0x735   :  { %1039 = vsyncpa [#allocation13], 1 }
 0x736   :  { %1041 = vsyncpa [#allocation13 + $0x1], 1 }

</bundles_post_ra>
